<compile_context>
chip_gen: v7x
topology: tpu7x:2x2x1
jax: 0.10.0
libtpu: 0.0.40
codegen_flags: <defaults>
</compile_context>

<pallas_src>
import functools

import jax
import jax.numpy as jnp
import numpy as np
from jax.experimental import pallas as pl
from jax.experimental.pallas import tpu as pltpu

LEAKY_SLOPE = 0.2


def _pick_spatial_tile(P, max_tile=512):
    """Largest lane tile TP <= max_tile with TP % 128 == 0 and P % TP == 0.

    Falls back to the full extent P (always a legal block size)."""
    if P <= max_tile:
        return P
    for t in range(max_tile, 0, -128):
        if t % 128 == 0 and P % t == 0:
            return t
    return P


def _disc_loss_kernel(p_ref, w1t_ref, b1_ref, w2t_ref, b2_ref, out_ref,
                      acc_ref, *, inv_b):
    b = pl.program_id(0)          # batch element
    pt = pl.program_id(1)         # spatial tile
    n_pt = pl.num_programs(1)

    @pl.when((b == 0) & (pt == 0))
    def _():
        out_ref[...] = jnp.zeros_like(out_ref)

    @pl.when(pt == 0)
    def _():
        acc_ref[...] = jnp.zeros_like(acc_ref)

    # conv-as-matmul, lane-dense: [F,K] @ [K,TP] -> [F,TP], bf16 in / f32 acc.
    h = jnp.dot(w1t_ref[...], p_ref[...], preferred_element_type=jnp.float32)
    h = h + b1_ref[...]                              # conv bias, column bcast
    h = jnp.where(h > 0, h, LEAKY_SLOPE * h)         # LeakyReLU(0.2), f32 VPU

    # fc partial for this batch's tile: sum_{f,p} h[f,p] * w2[f,p]
    hw = h * w2t_ref[...]                            # [F, TP] f32
    acc_ref[...] += jnp.sum(hw, axis=(0, 1), keepdims=True)

    @pl.when(pt == n_pt - 1)
    def _():
        pred = acc_ref[...] + b2_ref[...]            # [1,1] logit for batch b
        # loss contribution: softplus(-pred) / B, numerically stable
        neg = -pred
        sp = jnp.maximum(neg, 0.0) + jnp.log1p(jnp.exp(-jnp.abs(neg)))
        out_ref[...] += sp * inv_b


def discriminator_loss(x, w1, b1, w2, b2):
    """x: [B, C, H, W] float32 (NCHW).  Returns the scalar loss."""
    B, C, H, W = x.shape
    KH = KW = 3
    OH, OW = H // 2, W // 2
    P = OH * OW
    K = C * KH * KW
    F = w1.shape[1]

    # --- glue: im2col for the stride-2, pad-1, 3x3 conv; K-major layout so the
    # spatial axis rides the 128-lane dim inside the kernel (no transpose). ---
    patches = jax.lax.conv_general_dilated_patches(
        x, filter_shape=(KH, KW), window_strides=(2, 2),
        padding=((1, 1), (1, 1)))                       # [B, K, OH, OW]
    patches_t = patches.reshape(B, K, P).astype(jnp.bfloat16)   # [B, K, P]

    # --- parameters: passed once, no batch replication, no selector matrix ---
    w1t = w1.T.astype(jnp.bfloat16)                     # [F, K]  (MXU bf16)
    w2t = w2.T.astype(jnp.float32)                      # [F, P]  (small, f32)
    b1_2d = b1.reshape(F, 1).astype(jnp.float32)        # [F, 1]
    b2_2d = b2.reshape(1, 1).astype(jnp.float32)        # [1, 1]

    TP = _pick_spatial_tile(P)                          # lane tile (v7x-safe)
    num_pt = P // TP

    cost = pl.CostEstimate(
        flops=2 * B * P * K * F + 4 * B * P * F,
        transcendentals=2 * B,
        bytes_accessed=(patches_t.size * 2 + w1t.size * 2 + w2t.size * 4
                        + b1_2d.size * 4 + b2_2d.size * 4 + 4),
    )

    out = pl.pallas_call(
        functools.partial(_disc_loss_kernel, inv_b=1.0 / B),
        out_shape=jax.ShapeDtypeStruct((1, 1), jnp.float32),
        grid_spec=pltpu.PrefetchScalarGridSpec(
            num_scalar_prefetch=0,
            grid=(B, num_pt),
            in_specs=[
                # patches^T: per-batch, tiled over the spatial (lane) axis
                pl.BlockSpec((None, K, TP), lambda b, p: (b, 0, p)),
                # conv weight (transposed), replicated across the grid
                pl.BlockSpec((F, K), lambda b, p: (0, 0)),
                # conv bias as a column
                pl.BlockSpec((F, 1), lambda b, p: (0, 0)),
                # fc weight (transposed), tiled over the spatial axis
                pl.BlockSpec((F, TP), lambda b, p: (0, p)),
                # fc bias
                pl.BlockSpec((1, 1), lambda b, p: (0, 0)),
            ],
            out_specs=pl.BlockSpec((1, 1), lambda b, p: (0, 0)),
            scratch_shapes=[pltpu.VMEM((1, 1), jnp.float32)],  # per-batch logit
        ),
        compiler_params=pltpu.CompilerParams(
            # both axes accumulate into the single resident (1,1) output block
            dimension_semantics=("arbitrary", "arbitrary")),
        cost_estimate=cost,
    )(patches_t, w1t, b1_2d, w2t, b2_2d)
    return out[0, 0]


def reference_loss(x, w1, b1, w2, b2):
    """Pure-JAX f32 reference of the same synthetic discriminator + loss."""
    B, C, H, W = x.shape
    OH, OW = H // 2, W // 2
    K = C * 9
    patches = jax.lax.conv_general_dilated_patches(
        x, (3, 3), (2, 2), ((1, 1), (1, 1)))
    patches = patches.reshape(B, K, OH * OW).transpose(0, 2, 1)   # [B, P, K]
    h = patches @ w1 + b1.reshape(1, 1, -1)
    h = jnp.where(h > 0, h, LEAKY_SLOPE * h)
    pred = jnp.einsum('bpf,pf->b', h, w2) + b2.reshape(())
    return jnp.mean(jax.nn.softplus(-pred))


if __name__ == "__main__":
    B, C, H, W = 2, 4, 16, 16          # NCHW, like the PyTorch module
    F = 16                             # conv output channels
    OH, OW = H // 2, W // 2
    K = C * 3 * 3

    key = jax.random.PRNGKey(0)
    kx, kw1, kb1, kw2, kb2 = jax.random.split(key, 5)
    x = jax.random.normal(kx, (B, C, H, W), dtype=jnp.float32)

    # deterministic synthetic discriminator parameters
    w1 = 0.1 * jax.random.normal(kw1, (K, F), dtype=jnp.float32)       # conv weight (im2col form)
    b1 = 0.1 * jax.random.normal(kb1, (F,), dtype=jnp.float32)         # conv bias
    w2 = 0.05 * jax.random.normal(kw2, (OH * OW, F), dtype=jnp.float32)  # fc weight ((hw, c) order)
    b2 = 0.1 * jax.random.normal(kb2, (1,), dtype=jnp.float32)         # fc bias

    loss = jax.block_until_ready(discriminator_loss(x, w1, b1, w2, b2))
    ref = jax.block_until_ready(reference_loss(x, w1, b1, w2, b2))

    # bf16 matmul operands (f32 accumulation) => slightly relaxed tolerance
    np.testing.assert_allclose(np.asarray(loss), np.asarray(ref),
                               rtol=2e-2, atol=2e-2)
    print("KERNEL_OK")
</pallas_src>

<mosaic_0001>
module attributes {stable_mosaic.version = 11 : i64} {
  func.func @_disc_loss_kernel(%arg0: i32, %arg1: i32, %arg2: memref<1x36x64xbf16, #tpu.memory_space<vmem>>, %arg3: memref<16x36xbf16, #tpu.memory_space<vmem>>, %arg4: memref<16x1xf32, #tpu.memory_space<vmem>>, %arg5: memref<16x64xf32, #tpu.memory_space<vmem>>, %arg6: memref<1x1xf32, #tpu.memory_space<vmem>>, %arg7: memref<1x1xf32, #tpu.memory_space<vmem>>, %arg8: memref<1x1xf32, #tpu.memory_space<vmem>>) attributes {dimension_semantics = [#tpu.dimension_semantics<arbitrary>, #tpu.dimension_semantics<arbitrary>], iteration_bounds = array<i64: 2, 1>, scalar_prefetch = 0 : i64, scratch_operands = 1 : i64, tpu.core_type = #tpu.core_type<tc>, window_params = [{transform_indices = @transform_0, window_bounds = array<i64: 1, 36, 64>}, {pipeline_mode = #tpu.pipeline_mode<synchronous>, transform_indices = @transform_1, window_bounds = array<i64: 16, 36>}, {pipeline_mode = #tpu.pipeline_mode<synchronous>, transform_indices = @transform_2, window_bounds = array<i64: 16, 1>}, {transform_indices = @transform_3, window_bounds = array<i64: 16, 64>}, {pipeline_mode = #tpu.pipeline_mode<synchronous>, transform_indices = @transform_4, window_bounds = array<i64: 1, 1>}, {pipeline_mode = #tpu.pipeline_mode<synchronous>, transform_indices = @transform_5, window_bounds = array<i64: 1, 1>}]} {
    %c0_i32 = arith.constant 0 : i32
    %0 = arith.cmpi eq, %arg0, %c0_i32 : i32
    %c0_i32_0 = arith.constant 0 : i32
    %1 = arith.cmpi eq, %arg1, %c0_i32_0 : i32
    %2 = arith.andi %0, %1 : i1
    %3 = arith.extui %2 : i1 to i32
    %c0_i32_1 = arith.constant 0 : i32
    %4 = arith.cmpi ne, %3, %c0_i32_1 : i32
    scf.if %4 {
      %cst_21 = arith.constant 0.000000e+00 : f32
      %33 = vector.broadcast %cst_21 : f32 to vector<1x1xf32>
      %c0_22 = arith.constant 0 : index
      %c0_23 = arith.constant 0 : index
      %34 = vector.load %arg7[%c0_22, %c0_23] : memref<1x1xf32, #tpu.memory_space<vmem>>, vector<1x1xf32>
      tpu.vector_store %arg7[%c0_22, %c0_23], %33 {strides = array<i32>} : memref<1x1xf32, #tpu.memory_space<vmem>>, vector<1x1xf32>,
    } else {
    }
    %c0_i32_2 = arith.constant 0 : i32
    %5 = arith.cmpi eq, %arg1, %c0_i32_2 : i32
    %6 = arith.extui %5 : i1 to i32
    %c0_i32_3 = arith.constant 0 : i32
    %7 = arith.cmpi ne, %6, %c0_i32_3 : i32
    scf.if %7 {
      %cst_21 = arith.constant 0.000000e+00 : f32
      %33 = vector.broadcast %cst_21 : f32 to vector<1x1xf32>
      %c0_22 = arith.constant 0 : index
      %c0_23 = arith.constant 0 : index
      %34 = vector.load %arg8[%c0_22, %c0_23] : memref<1x1xf32, #tpu.memory_space<vmem>>, vector<1x1xf32>
      tpu.vector_store %arg8[%c0_22, %c0_23], %33 {strides = array<i32>} : memref<1x1xf32, #tpu.memory_space<vmem>>, vector<1x1xf32>,
    } else {
    }
    %c0 = arith.constant 0 : index
    %c0_4 = arith.constant 0 : index
    %8 = vector.load %arg3[%c0, %c0_4] : memref<16x36xbf16, #tpu.memory_space<vmem>>, vector<16x36xbf16>
    %c0_5 = arith.constant 0 : index
    %c0_6 = arith.constant 0 : index
    %c0_7 = arith.constant 0 : index
    %9 = vector.load %arg2[%c0_5, %c0_6, %c0_7] : memref<1x36x64xbf16, #tpu.memory_space<vmem>>, vector<1x36x64xbf16>
    %10 = vector.shape_cast %9 : vector<1x36x64xbf16> to vector<36x64xbf16>
    %cst = arith.constant dense<0.000000e+00> : vector<16x64xf32>
    %11 = tpu.matmul %8, %10, %cst {dimension_numbers = #tpu.dot_dimension_numbers<[1], [0], [0], [1], [0, 0, 1, 1], [], []>} : vector<16x36xbf16>, vector<36x64xbf16>, vector<16x64xf32> -> vector<16x64xf32>
    %c0_8 = arith.constant 0 : index
    %c0_9 = arith.constant 0 : index
    %12 = vector.load %arg4[%c0_8, %c0_9] : memref<16x1xf32, #tpu.memory_space<vmem>>, vector<16x1xf32>
    %13 = vector.broadcast %12 : vector<16x1xf32> to vector<16x64xf32>
    %14 = arith.addf %11, %13 : vector<16x64xf32>
    %cst_10 = arith.constant 0.000000e+00 : f32
    %15 = vector.broadcast %cst_10 : f32 to vector<16x64xf32>
    %16 = arith.cmpf ogt, %14, %15 : vector<16x64xf32>
    %cst_11 = arith.constant 2.000000e-01 : f32
    %17 = vector.broadcast %cst_11 : f32 to vector<16x64xf32>
    %18 = arith.mulf %17, %14 : vector<16x64xf32>
    %19 = arith.select %16, %14, %18 : vector<16x64xi1>, vector<16x64xf32>
    %c0_12 = arith.constant 0 : index
    %c0_13 = arith.constant 0 : index
    %20 = vector.load %arg5[%c0_12, %c0_13] : memref<16x64xf32, #tpu.memory_space<vmem>>, vector<16x64xf32>
    %21 = arith.mulf %19, %20 : vector<16x64xf32>
    %c0_14 = arith.constant 0 : index
    %c0_15 = arith.constant 0 : index
    %22 = vector.load %arg8[%c0_14, %c0_15] : memref<1x1xf32, #tpu.memory_space<vmem>>, vector<1x1xf32>
    %23 = vector.shape_cast %21 : vector<16x64xf32> to vector<1x16x64xf32>
    %cst_16 = arith.constant dense<0.000000e+00> : vector<1xf32>
    %24 = vector.multi_reduction <add>, %23, %cst_16 [1, 2] : vector<1x16x64xf32> to vector<1xf32>
    %25 = vector.shape_cast %24 : vector<1xf32> to vector<1x1x1xf32>
    %26 = vector.extract %25[0, 0, 0] : f32 from vector<1x1x1xf32>
    %27 = vector.broadcast %26 : f32 to vector<1x1xf32>
    %28 = arith.addf %22, %27 : vector<1x1xf32>
    %c0_17 = arith.constant 0 : index
    %c0_18 = arith.constant 0 : index
    %29 = vector.load %arg8[%c0_17, %c0_18] : memref<1x1xf32, #tpu.memory_space<vmem>>, vector<1x1xf32>
    tpu.vector_store %arg8[%c0_17, %c0_18], %28 {strides = array<i32>} : memref<1x1xf32, #tpu.memory_space<vmem>>, vector<1x1xf32>,
    %c0_i32_19 = arith.constant 0 : i32
    %30 = arith.cmpi eq, %arg1, %c0_i32_19 : i32
    %31 = arith.extui %30 : i1 to i32
    %c0_i32_20 = arith.constant 0 : i32
    %32 = arith.cmpi ne, %31, %c0_i32_20 : i32
    scf.if %32 {
      %c0_21 = arith.constant 0 : index
      %c0_22 = arith.constant 0 : index
      %33 = vector.load %arg8[%c0_21, %c0_22] : memref<1x1xf32, #tpu.memory_space<vmem>>, vector<1x1xf32>
      %c0_23 = arith.constant 0 : index
      %c0_24 = arith.constant 0 : index
      %34 = vector.load %arg6[%c0_23, %c0_24] : memref<1x1xf32, #tpu.memory_space<vmem>>, vector<1x1xf32>
      %35 = arith.addf %33, %34 : vector<1x1xf32>
      %cst_25 = arith.constant 0.000000e+00 : f32
      %36 = vector.broadcast %cst_25 : f32 to vector<1x1xf32>
      %37 = arith.subf %36, %35 : vector<1x1xf32>
      %cst_26 = arith.constant 0.000000e+00 : f32
      %38 = vector.broadcast %cst_26 : f32 to vector<1x1xf32>
      %39 = arith.maximumf %37, %38 : vector<1x1xf32>
      %40 = math.absf %37 : vector<1x1xf32>
      %cst_27 = arith.constant 0.000000e+00 : f32
      %41 = vector.broadcast %cst_27 : f32 to vector<1x1xf32>
      %42 = arith.subf %41, %40 : vector<1x1xf32>
      %43 = math.exp %42 : vector<1x1xf32>
      %44 = math.log1p %43 : vector<1x1xf32>
      %45 = arith.addf %39, %44 : vector<1x1xf32>
      %c0_28 = arith.constant 0 : index
      %c0_29 = arith.constant 0 : index
      %46 = vector.load %arg7[%c0_28, %c0_29] : memref<1x1xf32, #tpu.memory_space<vmem>>, vector<1x1xf32>
      %cst_30 = arith.constant 5.000000e-01 : f32
      %47 = vector.broadcast %cst_30 : f32 to vector<1x1xf32>
      %48 = arith.mulf %45, %47 : vector<1x1xf32>
      %49 = arith.addf %46, %48 : vector<1x1xf32>
      %c0_31 = arith.constant 0 : index
      %c0_32 = arith.constant 0 : index
      %50 = vector.load %arg7[%c0_31, %c0_32] : memref<1x1xf32, #tpu.memory_space<vmem>>, vector<1x1xf32>
      tpu.vector_store %arg7[%c0_31, %c0_32], %49 {strides = array<i32>} : memref<1x1xf32, #tpu.memory_space<vmem>>, vector<1x1xf32>,
    } else {
    }
    return
  }
  func.func @transform_0(%arg0: i32, %arg1: i32) -> (i32, i32, i32) {
    %c0_i32 = arith.constant 0 : i32
    %c0_i32_0 = arith.constant 0 : i32
    return %arg0, %c0_i32, %arg1 : i32, i32, i32
  }
  func.func @transform_1(%arg0: i32, %arg1: i32) -> (i32, i32) {
    %c0_i32 = arith.constant 0 : i32
    %c0_i32_0 = arith.constant 0 : i32
    %c0_i32_1 = arith.constant 0 : i32
    return %c0_i32, %c0_i32_0 : i32, i32
  }
  func.func @transform_2(%arg0: i32, %arg1: i32) -> (i32, i32) {
    %c0_i32 = arith.constant 0 : i32
    %c0_i32_0 = arith.constant 0 : i32
    %c0_i32_1 = arith.constant 0 : i32
    return %c0_i32, %c0_i32_0 : i32, i32
  }
  func.func @transform_3(%arg0: i32, %arg1: i32) -> (i32, i32) {
    %c0_i32 = arith.constant 0 : i32
    %c0_i32_0 = arith.constant 0 : i32
    return %c0_i32, %arg1 : i32, i32
  }
  func.func @transform_4(%arg0: i32, %arg1: i32) -> (i32, i32) {
    %c0_i32 = arith.constant 0 : i32
    %c0_i32_0 = arith.constant 0 : i32
    %c0_i32_1 = arith.constant 0 : i32
    return %c0_i32, %c0_i32_0 : i32, i32
  }
  func.func @transform_5(%arg0: i32, %arg1: i32) -> (i32, i32) {
    %c0_i32 = arith.constant 0 : i32
    %c0_i32_0 = arith.constant 0 : i32
    %c0_i32_1 = arith.constant 0 : i32
    return %c0_i32, %c0_i32_0 : i32, i32
  }
}

</mosaic_0001>

<bundles_post_ra>
// kernel: tpu_custom_call.1
= control target key start
LH: loop header
LB: loop body
LE: loop exit
PB: predicated region body
PF: predicated region fallthrough
CT: control target
= control target key end

     0   :  { %s732_s0 = inlined_call_operand.vmem [shape: bf16[2,36,64], index: 0, kind: input, shape index: {}]   ;;  %s733_s1 = inlined_call_operand.vmem [shape: bf16[16,36], index: 1, kind: input, shape index: {}]   ;;  %s734_s2 = inlined_call_operand.vmem [shape: f32[16,1], index: 2, kind: input, shape index: {}]   ;;  %s735_s3 = inlined_call_operand.vmem [shape: f32[16,64], index: 3, kind: input, shape index: {}]   ;;  %s736_s4 = inlined_call_operand.<no memory space> [shape: f32[1,1], index: 4, kind: input, shape index: {}]   ;;  %s737_s5 = inlined_call_operand.hbm [shape: f32[1,1], index: 5, kind: output, shape index: {}]  }
   0x1   :  { %v10_v0 = vstv %s736_s4 }
   0x2   :  { %11 = vst [vmem:[#allocation3] sm:$0x1] %v10_v0 }
   0x3   :  { %12 = vsyncpa [#allocation5], 0  ;;  %s655_s20 = smov 0   ;;  %s657_s21 = smov 0  }
   0x4   :  { %s659_s22 = smov 0  }
   0x5 LB: > { %s485_s4 = sadd.s32 4294967295, %s615_s22   ;;  %s30_s23 = sadd.s32 1, %s611_s21  ;;  %s615_s22 = sphi %s659_s22, %s18_s22   ;;  %s611_s21 = sphi %s657_s21, %s740_s21   ;;  %s607_s20 = sphi %s655_s20, %s739_s20  }
   0x6   : > { %p32_p0 = scmp.ge.s32.totalorder %s30_s23, 2  ;;  %p489_p1 = scmp.ge.s32.totalorder %s615_s22, 1 }
   0x7   : > { %p211_p2 = scmp.lt.s32.totalorder %s615_s22, 3 }
   0x8   : > { %s742_s23 = smov (%p32_p0, %s30_s23), 0 }
   0x9   : > { %p212_p3 = pnand %p489_p1, %p211_p2 }
   0xa   : > { %p241_p4 = scmp.lt.s32.totalorder (!%p212_p3), %s607_s20, 1  ;;  %p254_p5 = scmp.eq.s32.totalorder (!%p212_p3), %s607_s20, 0 }
   0xb   : > { %215 = sbr.rel (%p212_p3) target bundleno = 535 (0x217), region = 40 }
  0x12   : > { %s744_s20 = smov (!%p241_p4, %s607_s20), 1  ;;  %259 = sbr.rel (!%p254_p5) target bundleno = 25 (0x19), region = 44 }
  0x13   : > { %s516_s24 = smul.u32 20, %s744_s20  ;;  %vm260_vm0 = vcmask (%p254_p5), 0   ;;  %v617_v1 = vmov (%p254_p5), 0.0  }
  0x14   : > { %261 = vst.msk [vmem:[#allocation4] sm:$0x1] (%p254_p5), %vm260_vm0, %v617_v1 }
  0x15   : > { %s248_s27 = scalar_lea.vmem %s732_s0, %s516_s24 }
  0x19 PF: > { %v555_v2 = vld [vmem:[%s248_s27] sm:$0xff]   ;;  %v618_v3 = vmov 0.0   ;;  %v556_v4 = vld [vmem:[%s248_s27 + $0x8] sm:$0xff]   ;;  %v557_v5 = vld [vmem:[%s248_s27 + $0x10] ss:$0 sps:$4 sm:$0x33]  }
  0x1a   : > { %506 = vmatprep.subr.bf16.mxu0 %v618_v3  ;;  %vm619_vm1 = vmmov 0   ;;  %vm310_vm2 = vcmask 1041408   ;;  %v274_v6 = vld [vmem:[%s734_s2] sm:$0xff]  ;;  %v620_v7 = vmov 0   ;;  %v275_v9 = vld [vmem:[%s734_s2 + $0x8] sm:$0xff]  ;;  %vm306_vm3 = vcmask 293888  }
  0x1b   : > { %507 = vmatpush3.bf16.msra.mxu0 %v555_v2  ;;  %512 = vmatprep.mubr.msk.bf16.mxu0 %vm619_vm1, %v618_v3  ;;  %v312_v8 = vsel %vm310_vm2, %v557_v5, 0  ;;  %v558_v10 = vld [vmem:[%s733_s1] sm:$0xff]   ;;  %v362_v23 = vld [vmem:[%s735_s3 + $0x8] sm:$0xff]  ;;  %vm366_vm6 = vcmask 523264   ;;  %vm265_vm7 = vcmask 0   ;;  %s621_s14 = smov [#allocation4]  }
  0x1c   : > { %508 = vmatprep.subr.bf16.mxu0 %v618_v3  ;;  %554 = vset.pattern.permute.xlu0 %v620_v7  ;;  %v361_v20 = vld [vmem:[%s735_s3] sm:$0xff]  ;;  %266 = vst.msk [vmem:[#allocation2] sm:$0x1] %vm265_vm7, %v618_v3  ;;  %s416_s15 = sshll.u32 %s621_s14, 4  ;;  %p696_p6 = scmp.eq.s32.totalorder %s485_s4, 1  ;;  %s417_s15 = int_to_ptr.vmem [resolvable:$true] %s416_s15 }
  0x1d   : > { %278 = vperm.xlu0 %554, %v274_v6   ;;  %v387_v40 = vld [vmem:[#allocation3] sm:$0x1]  ;;  %v405_v58 = vld [vmem:[#allocation4] sm:$0x1]  ;;  %s563_s17 = scalar_lea.vmem %s417_s15, 16  ;;  %s569_s18 = scalar_lea.vmem %s417_s15, 32 }
  0x1e   : > { %p564_p7 = scmp.ne.s32.totalorder %s417_s15, %s563_s17  ;;  %p570_p10 = scmp.lt.s32.totalorder %s417_s15, %s417_s15 }
  0x1f   : > { %509 = vmatpush3.bf16.msra.mxu0 %v556_v4  ;;  %p571_p11 = scmp.lt.s32.totalorder %s569_s18, %s563_s17 }
  0x20   : > { %510 = vmatprep.subr.bf16.mxu0 %v618_v3  ;;  %p565_p8 = pnand %p564_p7, %p696_p6 }
  0x21   : > { %283 = vperm.xlu0 %554, %v275_v9   ;;  %p572_p12 = por %p571_p11, %p570_p10 }
  0x22   : > { %p566_p9 = pneg %p565_p8 }
  0x23   : > { %511 = vmatpush3.bf16.msra.mxu0 %v312_v8  ;;  %v365_v37 = vld [vmem:[#allocation2] sm:$0x1] }
  0x24   : > { %p573_p13 = pnand %p572_p12, %p566_p9 }
  0x26   : > { %513 = vmatmul.mubr.msk.bf16.vlgmr.msra.gmra.mrb[0].mxu0 %vm306_vm3, %v558_v10 }
  0x9c   : > { %v279_v11 = vpop.permute.xlu0 %278 }
  0xa0   : > { %v284_v15 = vpop.permute.xlu0 %283 }
  0xf9   : > { %v348_v12 = vpop.f32.mrb[0].mxu0 }
  0xfa   : > { %v349_v13 = vadd.f32 %v348_v12, %v279_v11  ;;  %v514_v14 = vpop.f32.mrb[1].mxu0 }
  0xfb   : > { %v351_v16 = vpop.f32.mrb[2].mxu0 }
  0xfc   : > { %vm355_vm4 = vcmp.gt.f32.partialorder %v349_v13, 0.0  ;;  %v357_v17 = vmul.f32 0.2, %v349_v13  ;;  %v352_v18 = vadd.f32 %v351_v16, %v284_v15  ;;  %v515_v19 = vpop.f32.mrb[3].mxu0 }
  0xfe   : > { %vm356_vm5 = vcmp.gt.f32.partialorder %v352_v18, 0.0  ;;  %v358_v21 = vmul.f32 0.2, %v352_v18  ;;  %v359_v22 = vsel %vm355_vm4, %v349_v13, %v357_v17 }
  0xff   : > { %v363_v24 = vmul.f32 %v361_v20, %v359_v22 }
 0x100   : > { %v360_v25 = vsel %vm356_vm5, %v352_v18, %v358_v21 }
 0x101   : > { %v364_v26 = vmul.f32 %v362_v23, %v360_v25  ;;  %v367_v27 = vsel %vm366_vm6, %v363_v24, 0.0 }
 0x103   : > { %v368_v28 = vsel %vm366_vm6, %v364_v26, 0.0 }
 0x104   : > { %v369_v29 = vadd.f32 %v368_v28, %v367_v27 }
 0x106   : > { %370 = vadd.xlane.f32.xlu1 %v369_v29 }
 0x193   : > { %v371_v30 = vpop.xlane.xlu1 %370 }
 0x194   : > { %v372_v31 = vrot.slane %v371_v30, 4 }
 0x196   : > { %v373_v32 = vadd.f32 %v372_v31, %v371_v30 }
 0x198   : > { %v374_v33 = vrot.slane %v373_v32, 2 }
 0x19a   : > { %v375_v34 = vadd.f32 %v374_v33, %v373_v32 }
 0x19c   : > { %v376_v35 = vrot.slane %v375_v34, 1 }
 0x19e   : > { %v377_v36 = vadd.f32 %v376_v35, %v375_v34 }
 0x1a0   : > { %517 = vpush %v377_v36 }
 0x1d1   : > { %s518_s13 = spop %517 }
 0x1d2   : > { %v379_v38 = vstv %s518_s13 }
 0x1d3   : > { %v380_v39 = vadd.f32 %v379_v38, %v365_v37 }
 0x1d5   : > { %382 = vst.msk [vmem:[#allocation2] sm:$0x1] %vm265_vm7, %v380_v39 }
 0x1dc   : > { %v386_v41 = vld [vmem:[#allocation2] sm:$0x1] }
 0x1dd   : > { %v388_v42 = vadd.f32 %v387_v40, %v386_v41 }
 0x1df   : > { %v389_v43 = vsub.f32 0.0, %v388_v42 }
 0x1e1   : > { %v391_v44 = vand.u32 2147483647, %v389_v43  ;;  %v390_v55 = vmax.f32 %v389_v43, 0.0 }
 0x1e3   : > { %v392_v45 = vsub.f32 0.0, %v391_v44 }
 0x1e5   : > { %v393_v46 = vmul.f32 1.442695, %v392_v45 }
 0x1e7   : > { %559 = vpow2.f32 %v393_v46 }
 0x1f1   : > { %v560_v47 = vpop.eup %559 }
 0x1f2   : > { %v395_v48 = vadd.f32 1.0, %v560_v47  ;;  %v398_v49 = vmul.f32 -0.5, %v560_v47  ;;  %v401_v51 = vand.u32 2147483647, %v560_v47 }
 0x1f4   : > { %561 = vlog2.f32 %v395_v48  ;;  %v399_v50 = vadd.f32 1.0, %v398_v49  ;;  %vm402_vm8 = vcmp.lt.f32.partialorder %v401_v51, 0.0004427343 }
 0x1f6   : > { %v400_v54 = vmul.f32 %v560_v47, %v399_v50 }
 0x1fe   : > { %v562_v52 = vpop.eup %561 }
 0x1ff   : > { %v397_v53 = vmul.f32 0.6931472, %v562_v52 }
 0x201   : > { %v403_v56 = vsel %vm402_vm8, %v400_v54, %v397_v53 }
 0x202   : > { %v404_v57 = vadd.f32 %v403_v56, %v390_v55 }
 0x204   : > { %v406_v59 = vmul.f32 0.5, %v404_v57 }
 0x206   : > { %v407_v60 = vadd.f32 %v406_v59, %v405_v58 }
 0x208   : > { %408 = vst.msk [vmem:[#allocation4] sm:$0x1] %vm265_vm7, %v407_v60 }
 0x209   : > { %576 = shalt.err (!%p573_p13)
}
 0x20a   : > { %s577_s4 = scalar_lea.hbm %s737_s5, 16 }
 0x20b   : > { %p578_p0 = scmp.ne.s32.totalorder %s737_s5, %s577_s4  ;;  %p583_p3 = scmp.lt.u32.totalorder %s577_s4, %s737_s5 }
 0x20d   : > { %p579_p1 = pnand %p578_p0, %p696_p6 }
 0x20f   : > { %p580_p2 = pneg %p579_p1 }
 0x211   : > { %p585_p4 = pnand %p583_p3, %p580_p2 }
 0x213   : > { %588 = shalt.err (!%p585_p4)
}
 0x214   : > { %520 = dma.vmem_to_hbm [thread:$0]  (%p696_p6), %s417_s15, 16, %s737_s5, [#allocation5]  }
 0x215   : > { %602 = dma.done.wait (%p696_p6), [#allocation5], 16  }
 0x216   : > { %604 = vsyncadd (%p696_p6), [#allocation5], 4294967280 }
 0x217 PF: > { %s18_s22 = sadd.s32 1, %s615_s22   ;;  %s739_s20 = smov %s611_s21 }
 0x218   : > { %p15_p5 = scmp.ge.s32.totalorder %s18_s22, 4   ;;  %s740_s21 = smov %s742_s23 }
 0x21a   :  { %17 = sbr.rel (!%p15_p5) target bundleno = 5 (0x5), region = 82 }
 0x221   :  { %429 = vsyncpa [#allocation5], 1 }
 0x222   :  { %431 = vsyncpa [#allocation5 + $0x1], 1 }

</bundles_post_ra>
